<compile_context>
chip_gen: v5e
topology: v5e:2x2
jax: 0.10.0
libtpu: 0.0.40
codegen_flags: <defaults>
</compile_context>

<pallas_src>
import jax
import jax.numpy as jnp
import numpy as np
from jax.experimental import pallas as pl
from jax.experimental.pallas import tpu as pltpu


# ----------------------------------------------------------------------------
# Pallas kernel: attention logit + per-bag online softmax + aggregation + logits
# ----------------------------------------------------------------------------
def classifier_kernel(pooled_ref, query_ref, attwT_ref, scope_ref, bias_ref,
                      out_ref, m_sc, d_sc, acc_sc):
    step = pl.program_id(0)
    ts = pooled_ref.shape[0]
    n_bags_pad = scope_ref.shape[1]

    @pl.when(step == 0)
    def _init():
        m_sc[...] = jnp.full_like(m_sc, -1e30)
        d_sc[...] = jnp.zeros_like(d_sc)
        acc_sc[...] = jnp.zeros_like(acc_sc)

    pooled = pooled_ref[...]                                    # [TS, D] bf16
    attwT = attwT_ref[...]                                      # [D, L]  bf16
    q = query_ref[...]                                          # [TS, 1] int32

    # __attention_train_logit__: sum(x * att(query), dim=1) == (x @ att.W^T)[i, query_i]
    per_label = jnp.dot(pooled, attwT,
                        preferred_element_type=jnp.float32)     # [TS, L] f32 (MXU bf16)
    lbl = jax.lax.broadcasted_iota(jnp.int32, per_label.shape, 1)
    att = jnp.sum(jnp.where(lbl == q, per_label, 0.0),
                  axis=1, keepdims=True)                        # [TS, 1] f32

    # Bag membership (sentences on sublanes, bags on lanes):
    # member[t, b] = start_b <= (step*TS + t) < end_b
    scope = scope_ref[...]                                      # [2, NB] int32
    starts = scope[0:1, :]                                      # [1, NB]
    ends = scope[1:2, :]                                        # [1, NB]
    row = step * ts + jax.lax.broadcasted_iota(jnp.int32, (ts, n_bags_pad), 0)
    member = (row >= starts) & (row < ends)                     # [TS, NB]

    neg_big = jnp.float32(-1e30)
    sc = jnp.where(member, att, neg_big)                        # [TS, NB]

    # Online (streaming) softmax accumulation across sentence chunks.
    m_prev = m_sc[...]                                          # [1, NB]
    m_new = jnp.maximum(m_prev, jnp.max(sc, axis=0, keepdims=True))
    corr = jnp.exp(m_prev - m_new)                              # [1, NB]
    # NOTE: the member mask below is load-bearing for bags with no members seen yet
    # (sc == m_new == -1e30 -> exp(0) == 1 without it). Do not remove.
    e = jnp.where(member, jnp.exp(sc - m_new), 0.0)             # [TS, NB] f32
    d_sc[...] = corr * d_sc[...] + jnp.sum(e, axis=0, keepdims=True)
    # acc[D, NB] += pooled^T @ e  (MXU-native X^T Y form, no transposes)
    acc_sc[...] = corr * acc_sc[...] + jax.lax.dot_general(
        pooled, e.astype(jnp.bfloat16),
        dimension_numbers=(((0,), (0,)), ((), ())),
        preferred_element_type=jnp.float32)                     # [D, NB]
    m_sc[...] = m_new

    @pl.when(step == pl.num_programs(0) - 1)
    def _finalize():
        # Guard empty bags (start == end) against 0/0; exact reciprocal (runs once).
        denom = jnp.maximum(d_sc[...], jnp.float32(1e-30))      # [1, NB]
        bag_repre_t = acc_sc[...] / denom                       # [D, NB]
        # NOTE: self.drop (nn.Dropout) is identity on this deterministic path.
        # __logit__: bag_repre @ att.weight.T + bias, in X^T Y form on the MXU.
        logits = jax.lax.dot_general(
            bag_repre_t.astype(jnp.bfloat16), attwT,
            dimension_numbers=(((0,), (0,)), ((), ())),
            preferred_element_type=jnp.float32)                 # [NB, L]
        out_ref[...] = logits + bias_ref[...]


# ----------------------------------------------------------------------------
# Host-side helpers: generation-aware VMEM budget and chunk sizing
# ----------------------------------------------------------------------------
def _round_up(x, m):
    return ((x + m - 1) // m) * m


def _vmem_budget_bytes():
    """~2/3 of physical VMEM (~42 MiB on v7x, ~85 MiB on v5e/v6e), capped at 100 MiB."""
    cap = None
    try:
        info = pltpu.get_tpu_info()
        for name in ("vmem_capacity_bytes", "vmem_bytes", "vmem_size_bytes"):
            v = getattr(info, name, None)
            if v:
                cap = int(v)
                break
    except Exception:
        cap = None
    if cap is None:
        try:
            kind = jax.devices()[0].device_kind.lower()
        except Exception:
            kind = ""
        cap = 64 * 1024 * 1024 if "v7" in kind else 128 * 1024 * 1024
    return min((cap * 2) // 3, 100 * 1024 * 1024)


def _choose_chunk_rows(dim_pad, n_bags_pad, vmem_budget):
    """Derive the sentence-chunk size from the VMEM budget (target 1-4 MB pooled blocks)."""
    # Fixed VMEM: acc scratch + m/d scratch + att_w^T buffers + slack for bias/scope/temps.
    fixed = (dim_pad * n_bags_pad * 4
             + 2 * 128 * max(n_bags_pad, 128) * 4
             + 2 * dim_pad * 128 * 2
             + 4 * 1024 * 1024)
    # Per-row VMEM: 2x pooled bf16 buffers + 2x lane-padded query int32 buffers
    # + ~4 live [ts, n_bags] f32 temporaries (member/sc/e/e_bf16), lane-padded.
    lanes_nb = max(n_bags_pad, 128)
    per_row = 2 * dim_pad * 2 + 2 * 128 * 4 + 4 * lanes_nb * 4
    avail = max(vmem_budget - fixed, 1 << 20)
    rows = avail // per_row
    rows = max(512, min(int(rows), 8192))
    return _round_up(rows, 8)


def classifier_forward_pallas(pooled_h, att_w, bias, query, scope, *, chunk_rows=None):
    """Training-branch forward (evaluate=False) given pooled_h = student_reps[:, 0]."""
    n_sent, dim = pooled_h.shape
    n_labels = att_w.shape[0]
    n_bags = scope.shape[0]

    dim_pad = _round_up(dim, 128)
    n_bags_pad = _round_up(max(n_bags, 1), 8)

    vmem_budget = _vmem_budget_bytes()
    if chunk_rows is None:
        chunk_rows = _choose_chunk_rows(dim_pad, n_bags_pad, vmem_budget)

    # Sentence-axis tiling (chunks must be multiples of 8 sublanes).
    ts = min(_round_up(chunk_rows, 8), _round_up(n_sent, 8))
    n_chunks = pl.cdiv(n_sent, ts)
    n_pad = n_chunks * ts

    # bf16 residency for the dominant N x D operand; query ids as int32 (4 B/row stream).
    pooled_p = jnp.zeros((n_pad, dim_pad), jnp.bfloat16).at[:n_sent, :dim].set(
        pooled_h.astype(jnp.bfloat16))
    query_p = jnp.zeros((n_pad, 1), jnp.int32).at[:n_sent, 0].set(query.astype(jnp.int32))

    attwT = jnp.zeros((dim_pad, n_labels), jnp.bfloat16).at[:dim].set(
        jnp.transpose(att_w).astype(jnp.bfloat16))               # [D_pad, L]
    bias2d = bias.reshape(1, n_labels).astype(jnp.float32)

    # Merged scope: row 0 = starts, row 1 = ends (bags on lanes). Padded bags are empty.
    scope2 = jnp.zeros((2, n_bags_pad), jnp.int32)
    scope2 = scope2.at[0, :n_bags].set(scope[:, 0].astype(jnp.int32))
    scope2 = scope2.at[1, :n_bags].set(scope[:, 1].astype(jnp.int32))

    grid_spec = pltpu.PrefetchScalarGridSpec(
        num_scalar_prefetch=0,
        grid=(n_chunks,),                                        # reduction axis
        in_specs=[
            pl.BlockSpec((ts, dim_pad), lambda s: (s, 0)),       # pooled (bf16)
            pl.BlockSpec((ts, 1), lambda s: (s, 0)),             # query ids (int32)
            pl.BlockSpec((dim_pad, n_labels), lambda s: (0, 0)), # att_w^T (bf16)
            pl.BlockSpec((2, n_bags_pad), lambda s: (0, 0)),     # scope starts/ends
            pl.BlockSpec((1, n_labels), lambda s: (0, 0)),       # bias
        ],
        out_specs=pl.BlockSpec((n_bags_pad, n_labels), lambda s: (0, 0)),
        scratch_shapes=[
            pltpu.VMEM((1, n_bags_pad), jnp.float32),            # running max
            pltpu.VMEM((1, n_bags_pad), jnp.float32),            # running denom
            pltpu.VMEM((dim_pad, n_bags_pad), jnp.float32),      # running weighted sum^T
        ],
    )

    out = pl.pallas_call(
        classifier_kernel,
        out_shape=jax.ShapeDtypeStruct((n_bags_pad, n_labels), jnp.float32),
        grid_spec=grid_spec,
        compiler_params=pltpu.CompilerParams(
            dimension_semantics=("arbitrary",),                  # single reduction axis
            vmem_limit_bytes=int(vmem_budget),                   # generation-aware budget
        ),
    )(pooled_p, query_p, attwT, scope2, bias2d)

    return out[:n_bags]


# ----------------------------------------------------------------------------
# Glue: deterministic toy encoder standing in for the pretrained TinyBERT
# ----------------------------------------------------------------------------
# TODO(synk): TinyBertForSequenceClassification.from_pretrained('./4L-312') cannot be
# reproduced in-script; a deterministic toy encoder provides student_reps instead.
def toy_transformer_reps(input_ids, segment_ids, input_mask, params):
    x = params["tok_emb"][input_ids] + params["seg_emb"][segment_ids]   # [N, S, D]
    x = x * input_mask[..., None].astype(x.dtype)
    x = jnp.tanh(x @ params["enc_w"] + params["enc_b"])
    return x


# ----------------------------------------------------------------------------
# Pure-JAX f32 reference of the PyTorch forward (evaluate=False) for verification
# ----------------------------------------------------------------------------
def reference_forward(pooled_h, att_w, bias, query, scope_np):
    rel = att_w[query]
    att_logit = jnp.sum(pooled_h * rel, axis=1, keepdims=True)
    bags = []
    for i in range(scope_np.shape[0]):
        s, e = int(scope_np[i, 0]), int(scope_np[i, 1])
        mat = pooled_h[s:e]
        sc = jax.nn.softmax(jnp.transpose(att_logit[s:e]), axis=1)
        bags.append(jnp.squeeze(sc @ mat))
    bag_repre = jnp.stack(bags)
    return bag_repre @ att_w.T + bias


if __name__ == "__main__":
    # Small shapes consistent with the module's forward
    N_SENT, SEQ, DIM = 24, 8, 128
    VOCAB, N_LABELS = 50, 8
    N_BAGS = 3

    key = jax.random.PRNGKey(0)
    k_tok, k_seg, k_w, k_b, k_att, k_bias, k_ids, k_q = jax.random.split(key, 8)

    # Toy transformer params (deterministic)
    params = {
        "tok_emb": jax.random.normal(k_tok, (VOCAB, DIM), jnp.float32) * 0.02,
        "seg_emb": jax.random.normal(k_seg, (2, DIM), jnp.float32) * 0.02,
        "enc_w": jax.random.normal(k_w, (DIM, DIM), jnp.float32) * 0.05,
        "enc_b": jax.random.normal(k_b, (DIM,), jnp.float32) * 0.01,
    }

    # Classifier params: att.weight (xavier_uniform), bias (normal)
    limit = np.sqrt(6.0 / (N_LABELS + DIM)).astype(np.float32)
    att_w = jax.random.uniform(k_att, (N_LABELS, DIM), jnp.float32, -limit, limit)
    bias = jax.random.normal(k_bias, (N_LABELS,), jnp.float32)

    # Module inputs
    input_ids = jax.random.randint(k_ids, (N_SENT, SEQ), 0, VOCAB, jnp.int32)
    segment_ids = jnp.zeros((N_SENT, SEQ), jnp.int32)
    input_mask = jnp.ones((N_SENT, SEQ), jnp.int32)
    query = jax.random.randint(k_q, (N_SENT,), 0, N_LABELS, jnp.int32)
    scope = jnp.array([[0, 5], [5, 14], [14, 24]], jnp.int32)   # bags cross chunk boundaries

    # student_reps -> pooled_h = reps[:, 0]
    reps = toy_transformer_reps(input_ids, segment_ids, input_mask, params)
    pooled_h = reps[:, 0]                                       # [N, D]

    ref = reference_forward(pooled_h, att_w, bias, query, np.asarray(scope))

    # 1) Multi-chunk path: chunk_rows=8 -> 3 grid steps, exercises the online-softmax
    #    accumulation across sentence chunks with bags straddling chunk boundaries.
    logits_mc = classifier_forward_pallas(pooled_h, att_w, bias, query, scope, chunk_rows=8)
    logits_mc = jax.block_until_ready(logits_mc)
    np.testing.assert_allclose(np.asarray(logits_mc), np.asarray(ref),
                               rtol=2e-2, atol=2e-2)

    # 2) Default path: VMEM-budget-derived chunk size (single chunk at this small N).
    logits = classifier_forward_pallas(pooled_h, att_w, bias, query, scope)
    logits = jax.block_until_ready(logits)
    np.testing.assert_allclose(np.asarray(logits), np.asarray(ref),
                               rtol=2e-2, atol=2e-2)

    # TODO(synk): evaluate=True branch (per-relation bag logits + diag of softmax) not kernelized.
    print("KERNEL_OK")
</pallas_src>

<mosaic_0001>
module attributes {stable_mosaic.version = 11 : i64} {
  func.func @classifier_kernel(%arg0: i32, %arg1: memref<8x128xbf16, #tpu.memory_space<vmem>>, %arg2: memref<8x1xi32, #tpu.memory_space<vmem>>, %arg3: memref<128x8xbf16, #tpu.memory_space<vmem>>, %arg4: memref<2x8xi32, #tpu.memory_space<vmem>>, %arg5: memref<1x8xf32, #tpu.memory_space<vmem>>, %arg6: memref<8x8xf32, #tpu.memory_space<vmem>>, %arg7: memref<1x8xf32, #tpu.memory_space<vmem>>, %arg8: memref<1x8xf32, #tpu.memory_space<vmem>>, %arg9: memref<128x8xf32, #tpu.memory_space<vmem>>) attributes {dimension_semantics = [#tpu.dimension_semantics<arbitrary>], iteration_bounds = array<i64: 3>, scalar_prefetch = 0 : i64, scratch_operands = 3 : i64, tpu.core_type = #tpu.core_type<tc>, window_params = [{transform_indices = @transform_0, window_bounds = array<i64: 8, 128>}, {transform_indices = @transform_1, window_bounds = array<i64: 8, 1>}, {pipeline_mode = #tpu.pipeline_mode<synchronous>, transform_indices = @transform_2, window_bounds = array<i64: 128, 8>}, {pipeline_mode = #tpu.pipeline_mode<synchronous>, transform_indices = @transform_3, window_bounds = array<i64: 2, 8>}, {pipeline_mode = #tpu.pipeline_mode<synchronous>, transform_indices = @transform_4, window_bounds = array<i64: 1, 8>}, {pipeline_mode = #tpu.pipeline_mode<synchronous>, transform_indices = @transform_5, window_bounds = array<i64: 8, 8>}]} {
    %c0_i32 = arith.constant 0 : i32
    %0 = arith.cmpi eq, %arg0, %c0_i32 : i32
    %1 = arith.extui %0 : i1 to i32
    %c0_i32_0 = arith.constant 0 : i32
    %2 = arith.cmpi ne, %1, %c0_i32_0 : i32
    scf.if %2 {
      %cst_28 = arith.constant -1.000000e+30 : f32
      %58 = vector.broadcast %cst_28 : f32 to vector<1x8xf32>
      %c0_29 = arith.constant 0 : index
      %c0_30 = arith.constant 0 : index
      %59 = vector.load %arg7[%c0_29, %c0_30] : memref<1x8xf32, #tpu.memory_space<vmem>>, vector<1x8xf32>
      tpu.vector_store %arg7[%c0_29, %c0_30], %58 {strides = array<i32>} : memref<1x8xf32, #tpu.memory_space<vmem>>, vector<1x8xf32>,
      %cst_31 = arith.constant 0.000000e+00 : f32
      %60 = vector.broadcast %cst_31 : f32 to vector<1x8xf32>
      %c0_32 = arith.constant 0 : index
      %c0_33 = arith.constant 0 : index
      %61 = vector.load %arg8[%c0_32, %c0_33] : memref<1x8xf32, #tpu.memory_space<vmem>>, vector<1x8xf32>
      tpu.vector_store %arg8[%c0_32, %c0_33], %60 {strides = array<i32>} : memref<1x8xf32, #tpu.memory_space<vmem>>, vector<1x8xf32>,
      %cst_34 = arith.constant 0.000000e+00 : f32
      %62 = vector.broadcast %cst_34 : f32 to vector<128x8xf32>
      %c0_35 = arith.constant 0 : index
      %c0_36 = arith.constant 0 : index
      %63 = vector.load %arg9[%c0_35, %c0_36] : memref<128x8xf32, #tpu.memory_space<vmem>>, vector<128x8xf32>
      tpu.vector_store %arg9[%c0_35, %c0_36], %62 {strides = array<i32>} : memref<128x8xf32, #tpu.memory_space<vmem>>, vector<128x8xf32>,
    } else {
    }
    %c0 = arith.constant 0 : index
    %c0_1 = arith.constant 0 : index
    %3 = vector.load %arg1[%c0, %c0_1] : memref<8x128xbf16, #tpu.memory_space<vmem>>, vector<8x128xbf16>
    %c0_2 = arith.constant 0 : index
    %c0_3 = arith.constant 0 : index
    %4 = vector.load %arg3[%c0_2, %c0_3] : memref<128x8xbf16, #tpu.memory_space<vmem>>, vector<128x8xbf16>
    %c0_4 = arith.constant 0 : index
    %c0_5 = arith.constant 0 : index
    %5 = vector.load %arg2[%c0_4, %c0_5] : memref<8x1xi32, #tpu.memory_space<vmem>>, vector<8x1xi32>
    %cst = arith.constant dense<0.000000e+00> : vector<8x8xf32>
    %6 = tpu.matmul %3, %4, %cst {dimension_numbers = #tpu.dot_dimension_numbers<[1], [0], [0], [1], [0, 0, 1, 1], [], []>} : vector<8x128xbf16>, vector<128x8xbf16>, vector<8x8xf32> -> vector<8x8xf32>
    %7 = tpu.iota {dimensions = array<i32: 1>} : vector<8x8xi32>
    %8 = vector.broadcast %5 : vector<8x1xi32> to vector<8x8xi32>
    %9 = arith.cmpi eq, %7, %8 : vector<8x8xi32>
    %cst_6 = arith.constant 0.000000e+00 : f32
    %10 = vector.broadcast %cst_6 : f32 to vector<8x8xf32>
    %11 = arith.select %9, %6, %10 : vector<8x8xi1>, vector<8x8xf32>
    %cst_7 = arith.constant dense<0.000000e+00> : vector<8xf32>
    %12 = vector.multi_reduction <add>, %11, %cst_7 [1] : vector<8x8xf32> to vector<8xf32>
    %13 = vector.shape_cast %12 : vector<8xf32> to vector<8x1xf32>
    %c0_8 = arith.constant 0 : index
    %c0_9 = arith.constant 0 : index
    %14 = vector.load %arg4[%c0_8, %c0_9] : memref<2x8xi32, #tpu.memory_space<vmem>>, vector<2x8xi32>
    %15 = vector.extract_strided_slice %14 {offsets = [0, 0], sizes = [1, 8], strides = [1, 1]} : vector<2x8xi32> to vector<1x8xi32>
    %16 = vector.extract_strided_slice %14 {offsets = [1, 0], sizes = [1, 8], strides = [1, 1]} : vector<2x8xi32> to vector<1x8xi32>
    %c8_i32 = arith.constant 8 : i32
    %17 = arith.muli %arg0, %c8_i32 : i32
    %18 = tpu.iota {dimensions = array<i32: 0>} : vector<8x8xi32>
    %19 = vector.broadcast %17 : i32 to vector<8x8xi32>
    %20 = arith.addi %19, %18 : vector<8x8xi32>
    %21 = vector.broadcast %15 : vector<1x8xi32> to vector<8x8xi32>
    %22 = arith.cmpi sge, %20, %21 : vector<8x8xi32>
    %23 = vector.broadcast %16 : vector<1x8xi32> to vector<8x8xi32>
    %24 = arith.cmpi slt, %20, %23 : vector<8x8xi32>
    %25 = arith.andi %22, %24 : vector<8x8xi1>
    %cst_10 = arith.constant -1.000000e+30 : f32
    %26 = vector.shape_cast %13 : vector<8x1xf32> to vector<8x1xf32>
    %27 = vector.broadcast %26 : vector<8x1xf32> to vector<8x8xf32>
    %28 = vector.broadcast %cst_10 : f32 to vector<8x8xf32>
    %29 = arith.select %25, %27, %28 : vector<8x8xi1>, vector<8x8xf32>
    %c0_11 = arith.constant 0 : index
    %c0_12 = arith.constant 0 : index
    %30 = vector.load %arg7[%c0_11, %c0_12] : memref<1x8xf32, #tpu.memory_space<vmem>>, vector<1x8xf32>
    %cst_13 = arith.constant dense<0xFF800000> : vector<8xf32>
    %31 = vector.multi_reduction <maximumf>, %29, %cst_13 [0] : vector<8x8xf32> to vector<8xf32>
    %32 = vector.shape_cast %31 : vector<8xf32> to vector<1x8xf32>
    %33 = arith.maximumf %30, %32 : vector<1x8xf32>
    %34 = arith.subf %30, %33 : vector<1x8xf32>
    %35 = math.exp %34 : vector<1x8xf32>
    %36 = vector.broadcast %33 : vector<1x8xf32> to vector<8x8xf32>
    %37 = arith.subf %29, %36 : vector<8x8xf32>
    %38 = math.exp %37 : vector<8x8xf32>
    %cst_14 = arith.constant 0.000000e+00 : f32
    %39 = vector.broadcast %cst_14 : f32 to vector<8x8xf32>
    %40 = arith.select %25, %38, %39 : vector<8x8xi1>, vector<8x8xf32>
    %c0_15 = arith.constant 0 : index
    %c0_16 = arith.constant 0 : index
    %41 = vector.load %arg8[%c0_15, %c0_16] : memref<1x8xf32, #tpu.memory_space<vmem>>, vector<1x8xf32>
    %42 = arith.mulf %35, %41 : vector<1x8xf32>
    %cst_17 = arith.constant dense<0.000000e+00> : vector<8xf32>
    %43 = vector.multi_reduction <add>, %40, %cst_17 [0] : vector<8x8xf32> to vector<8xf32>
    %44 = vector.shape_cast %43 : vector<8xf32> to vector<1x8xf32>
    %45 = arith.addf %42, %44 : vector<1x8xf32>
    %c0_18 = arith.constant 0 : index
    %c0_19 = arith.constant 0 : index
    %46 = vector.load %arg8[%c0_18, %c0_19] : memref<1x8xf32, #tpu.memory_space<vmem>>, vector<1x8xf32>
    tpu.vector_store %arg8[%c0_18, %c0_19], %45 {strides = array<i32>} : memref<1x8xf32, #tpu.memory_space<vmem>>, vector<1x8xf32>,
    %c0_20 = arith.constant 0 : index
    %c0_21 = arith.constant 0 : index
    %47 = vector.load %arg9[%c0_20, %c0_21] : memref<128x8xf32, #tpu.memory_space<vmem>>, vector<128x8xf32>
    %48 = vector.broadcast %35 : vector<1x8xf32> to vector<128x8xf32>
    %49 = arith.mulf %48, %47 : vector<128x8xf32>
    %50 = arith.truncf %40 : vector<8x8xf32> to vector<8x8xbf16>
    %cst_22 = arith.constant dense<0.000000e+00> : vector<128x8xf32>
    %51 = tpu.matmul %3, %50, %cst_22 {dimension_numbers = #tpu.dot_dimension_numbers<[0], [0], [1], [1], [0, 1, 1, 1], [], []>} : vector<8x128xbf16>, vector<8x8xbf16>, vector<128x8xf32> -> vector<128x8xf32>
    %52 = arith.addf %49, %51 : vector<128x8xf32>
    %c0_23 = arith.constant 0 : index
    %c0_24 = arith.constant 0 : index
    %53 = vector.load %arg9[%c0_23, %c0_24] : memref<128x8xf32, #tpu.memory_space<vmem>>, vector<128x8xf32>
    tpu.vector_store %arg9[%c0_23, %c0_24], %52 {strides = array<i32>} : memref<128x8xf32, #tpu.memory_space<vmem>>, vector<128x8xf32>,
    %c0_25 = arith.constant 0 : index
    %c0_26 = arith.constant 0 : index
    %54 = vector.load %arg7[%c0_25, %c0_26] : memref<1x8xf32, #tpu.memory_space<vmem>>, vector<1x8xf32>
    tpu.vector_store %arg7[%c0_25, %c0_26], %33 {strides = array<i32>} : memref<1x8xf32, #tpu.memory_space<vmem>>, vector<1x8xf32>,
    %c2_i32 = arith.constant 2 : i32
    %55 = arith.cmpi eq, %arg0, %c2_i32 : i32
    %56 = arith.extui %55 : i1 to i32
    %c0_i32_27 = arith.constant 0 : i32
    %57 = arith.cmpi ne, %56, %c0_i32_27 : i32
    scf.if %57 {
      %c0_28 = arith.constant 0 : index
      %c0_29 = arith.constant 0 : index
      %58 = vector.load %arg8[%c0_28, %c0_29] : memref<1x8xf32, #tpu.memory_space<vmem>>, vector<1x8xf32>
      %cst_30 = arith.constant 1.000000e-30 : f32
      %59 = vector.broadcast %cst_30 : f32 to vector<1x8xf32>
      %60 = arith.maximumf %58, %59 : vector<1x8xf32>
      %c0_31 = arith.constant 0 : index
      %c0_32 = arith.constant 0 : index
      %61 = vector.load %arg9[%c0_31, %c0_32] : memref<128x8xf32, #tpu.memory_space<vmem>>, vector<128x8xf32>
      %62 = vector.broadcast %60 : vector<1x8xf32> to vector<128x8xf32>
      %63 = arith.divf %61, %62 : vector<128x8xf32>
      %64 = arith.truncf %63 : vector<128x8xf32> to vector<128x8xbf16>
      %cst_33 = arith.constant dense<0.000000e+00> : vector<8x8xf32>
      %65 = tpu.matmul %64, %4, %cst_33 {dimension_numbers = #tpu.dot_dimension_numbers<[0], [0], [1], [1], [0, 1, 1, 1], [], []>} : vector<128x8xbf16>, vector<128x8xbf16>, vector<8x8xf32> -> vector<8x8xf32>
      %c0_34 = arith.constant 0 : index
      %c0_35 = arith.constant 0 : index
      %66 = vector.load %arg5[%c0_34, %c0_35] : memref<1x8xf32, #tpu.memory_space<vmem>>, vector<1x8xf32>
      %67 = vector.broadcast %66 : vector<1x8xf32> to vector<8x8xf32>
      %68 = arith.addf %65, %67 : vector<8x8xf32>
      %c0_36 = arith.constant 0 : index
      %c0_37 = arith.constant 0 : index
      %69 = vector.load %arg6[%c0_36, %c0_37] : memref<8x8xf32, #tpu.memory_space<vmem>>, vector<8x8xf32>
      tpu.vector_store %arg6[%c0_36, %c0_37], %68 {strides = array<i32>} : memref<8x8xf32, #tpu.memory_space<vmem>>, vector<8x8xf32>,
    } else {
    }
    return
  }
  func.func @transform_0(%arg0: i32) -> (i32, i32) {
    %c0_i32 = arith.constant 0 : i32
    %c0_i32_0 = arith.constant 0 : i32
    return %arg0, %c0_i32 : i32, i32
  }
  func.func @transform_1(%arg0: i32) -> (i32, i32) {
    %c0_i32 = arith.constant 0 : i32
    %c0_i32_0 = arith.constant 0 : i32
    return %arg0, %c0_i32 : i32, i32
  }
  func.func @transform_2(%arg0: i32) -> (i32, i32) {
    %c0_i32 = arith.constant 0 : i32
    %c0_i32_0 = arith.constant 0 : i32
    %c0_i32_1 = arith.constant 0 : i32
    return %c0_i32, %c0_i32_0 : i32, i32
  }
  func.func @transform_3(%arg0: i32) -> (i32, i32) {
    %c0_i32 = arith.constant 0 : i32
    %c0_i32_0 = arith.constant 0 : i32
    %c0_i32_1 = arith.constant 0 : i32
    return %c0_i32, %c0_i32_0 : i32, i32
  }
  func.func @transform_4(%arg0: i32) -> (i32, i32) {
    %c0_i32 = arith.constant 0 : i32
    %c0_i32_0 = arith.constant 0 : i32
    %c0_i32_1 = arith.constant 0 : i32
    return %c0_i32, %c0_i32_0 : i32, i32
  }
  func.func @transform_5(%arg0: i32) -> (i32, i32) {
    %c0_i32 = arith.constant 0 : i32
    %c0_i32_0 = arith.constant 0 : i32
    %c0_i32_1 = arith.constant 0 : i32
    return %c0_i32, %c0_i32_0 : i32, i32
  }
}

</mosaic_0001>

<bundles_post_ra>
// kernel: tpu_custom_call.1
= control target key start
LH: loop header
LB: loop body
LE: loop exit
PB: predicated region body
PF: predicated region fallthrough
CT: control target
= control target key end

     0   :  { %10 = vsyncpa [#allocation6], 0  ;;  %s868_s18 = smov 0   ;;  %s1050_s0 = inlined_call_operand.vmem [shape: bf16[24,128], index: 0, kind: input, shape index: {}]   ;;  %s1051_s1 = inlined_call_operand.vmem [shape: s32[24,1], index: 1, kind: input, shape index: {}]   ;;  %s1052_s2 = inlined_call_operand.vmem [shape: bf16[128,8], index: 2, kind: input, shape index: {}]   ;;  %s1053_s3 = inlined_call_operand.vmem [shape: s32[2,8], index: 3, kind: input, shape index: {}]   ;;  %s1054_s4 = inlined_call_operand.vmem [shape: f32[1,8], index: 4, kind: input, shape index: {}]   ;;  %s1055_s5 = inlined_call_operand.hbm [shape: f32[8,8], index: 5, kind: output, shape index: {}]  }
   0x1 LB: > { %s874_s19 = sadd.s32 4294967295, %s832_s18   ;;  %p705_p0 = scmp.ge.s32.totalorder %s832_s18, 1  ;;  %s832_s18 = sphi %s868_s18, %s16_s18  }
   0x2   : > { %p191_p1 = scmp.lt.s32.totalorder %s832_s18, 4 }
   0x4   : > { %p192_p2 = pnand %p705_p0, %p191_p1 }
   0x5   : > { %p217_p3 = scmp.lt.s32.totalorder (!%p192_p2), %s874_s19, 2  ;;  %p708_p4 = scmp.ne.s32.totalorder (!%p192_p2), %s874_s19, 0 }
   0x6   : > { %195 = sbr.rel (%p192_p2) target bundleno = 861 (0x35d), region = 40 }
   0xb   : > { %s218_s20 = scalar_select %p217_p3, %s874_s19, 2 }
   0xc   : > { %229 = sbr.rel (%p708_p4) target bundleno = 36 (0x24), region = 44 }
   0xd   : > { %s706_s21 = sshll.u32 %s218_s20, 2  ;;  %s707_s22 = sshll.u32 %s218_s20, 3 }
   0xe   : > { %s883_s25 = scalar_lea.vmem %s1050_s0, %s706_s21  ;;  %s888_s28 = scalar_lea.vmem %s1051_s1, %s707_s22 }
  0x11   : > { %vm230_vm0 = vcmask 57344   ;;  %vm233_vm1 = vcmask 64512   ;;  %v834_v0 = vmov -1e+30   ;;  %v835_v1 = vmov 0.0  }
  0x12   : > { %231 = vst.msk [vmem:[#allocation2] sm:$0x1] %vm230_vm0, %v834_v0 }
  0x13   : > { %232 = vst.msk [vmem:[#allocation3] sm:$0x1] %vm230_vm0, %v835_v1 }
  0x14   : > { %234 = vst.msk [vmem:[#allocation4] sm:$0xff] %vm233_vm1, %v835_v1 }
  0x15   : > { %235 = vst.msk [vmem:[#allocation4 + $0x8] sm:$0xff] %vm233_vm1, %v835_v1 }
  0x16   : > { %236 = vst.msk [vmem:[#allocation4 + $0x10] sm:$0xff] %vm233_vm1, %v835_v1 }
  0x17   : > { %237 = vst.msk [vmem:[#allocation4 + $0x18] sm:$0xff] %vm233_vm1, %v835_v1 }
  0x18   : > { %238 = vst.msk [vmem:[#allocation4 + $0x20] sm:$0xff] %vm233_vm1, %v835_v1 }
  0x19   : > { %239 = vst.msk [vmem:[#allocation4 + $0x28] sm:$0xff] %vm233_vm1, %v835_v1 }
  0x1a   : > { %240 = vst.msk [vmem:[#allocation4 + $0x30] sm:$0xff] %vm233_vm1, %v835_v1 }
  0x1b   : > { %241 = vst.msk [vmem:[#allocation4 + $0x38] sm:$0xff] %vm233_vm1, %v835_v1 }
  0x1c   : > { %242 = vst.msk [vmem:[#allocation4 + $0x40] sm:$0xff] %vm233_vm1, %v835_v1 }
  0x1d   : > { %243 = vst.msk [vmem:[#allocation4 + $0x48] sm:$0xff] %vm233_vm1, %v835_v1 }
  0x1e   : > { %244 = vst.msk [vmem:[#allocation4 + $0x50] sm:$0xff] %vm233_vm1, %v835_v1 }
  0x1f   : > { %245 = vst.msk [vmem:[#allocation4 + $0x58] sm:$0xff] %vm233_vm1, %v835_v1 }
  0x20   : > { %246 = vst.msk [vmem:[#allocation4 + $0x60] sm:$0xff] %vm233_vm1, %v835_v1 }
  0x21   : > { %247 = vst.msk [vmem:[#allocation4 + $0x68] sm:$0xff] %vm233_vm1, %v835_v1 }
  0x22   : > { %248 = vst.msk [vmem:[#allocation4 + $0x70] sm:$0xff] %vm233_vm1, %v835_v1 }
  0x23   : > { %249 = vst.msk [vmem:[#allocation4 + $0x78] sm:$0xff] %vm233_vm1, %v835_v1 }
  0x24 PF: > { %v910_v2 = vld [vmem:[%s1052_s2 + $0x38] sm:$0xff]  ;;  %v916_v3 = vld [vmem:[%s1052_s2 + $0x30] sm:$0xff]  ;;  %v250_v4 = vld [vmem:[%s883_s25] sm:$0xf]  ;;  %v836_v5 = vmov 0   ;;  %v329_v13 = vlaneseq  ;;  %vm336_vm3 = vcmask 64512  }
  0x25   : > { %316 = vmatpush.bf16.msra.mxu0 %v910_v2  ;;  %786 = vset.pattern.permute.xlu0 %v836_v5  ;;  %v267_v6 = vld [vmem:[%s888_s28] sm:$0xff]  ;;  %v924_v7 = vld [vmem:[%s1052_s2 + $0x28] sm:$0xff]  ;;  %v936_v9 = vld [vmem:[%s1052_s2 + $0x18] sm:$0xff]  ;;  %s741_s22 = sshll.u32 %s874_s19, 3  ;;  %vm381_vm7 = vcmask 57344   ;;  %vm459_vm8 = vcmask 1043456  }
  0x26   : > { %419 = vxpose.xlu1.c.b16.start.end [1/1] (short) %v250_v4, 128  ;;  %332 = vperm.xlu0 %786, %v267_v6   ;;  %v930_v8 = vld [vmem:[%s1052_s2 + $0x20] sm:$0xff]  ;;  %v942_v10 = vld [vmem:[%s1052_s2 + $0x10] sm:$0xff]  ;;  %v948_v11 = vld [vmem:[%s1052_s2 + $0x8] sm:$0xff]  ;;  %v330_v14 = vand.u32 127, %v329_v13  ;;  %v343_v22 = vshrl.u32 %v329_v13, 7  ;;  %v344_v24 = vstv %s741_s22  ;;  %p750_p5 = scmp.ne.s32.totalorder %s874_s19, 2 }
  0x27   : > { %v954_v12 = vld [vmem:[%s1052_s2] sm:$0xff] }
  0x28   : > { %v340_v23 = vld [vmem:[%s1053_s3] sm:$0x3]  ;;  %v345_v25 = vadd.s32 %v344_v24, %v343_v22  ;;  %v383_v6 = vld [vmem:[#allocation4] sm:$0xff]  ;;  %v396_v29 = vld [vmem:[#allocation4 + $0x68] sm:$0xff] }
  0x29   : > { %317 = vmatpush.bf16.msra.mxu0 %v916_v3  ;;  %v346_v26 = vperm.slane %v340_v23, 0  ;;  %v348_v27 = vperm.slane %v340_v23, 1  ;;  %v352_v40 = vld [vmem:[#allocation2] sm:$0x1]  ;;  %v371_v61 = vld [vmem:[#allocation3] sm:$0x1] }
  0x2a   : > { %v390_v28 = vld [vmem:[#allocation4 + $0x38] sm:$0xff] }
  0x2b   : > { %vm962_vm4 = vcmp.ge.s32.totalorder %v345_v25, %v346_v26  ;;  %vm966_vm5 = vcmp.lt.s32.totalorder %v345_v25, %v348_v27 }
  0x2c   : > { %vm350_vm6 = vmand %vm962_vm4, %vm966_vm5 }
  0x2d   : > { %318 = vmatpush.bf16.msra.mxu0 %v924_v7 }
  0x31   : > { %319 = vmatpush.bf16.msra.mxu0 %v930_v8 }
  0x35   : > { %320 = vmatpush.bf16.msra.mxu0 %v936_v9 }
  0x39   : > { %321 = vmatpush.bf16.msra.mxu0 %v942_v10 }
  0x3d   : > { %322 = vmatpush.bf16.msra.mxu0 %v948_v11 }
  0x41   : > { %323 = vmatpush.bf16.msra.mxu0 %v954_v12 }
  0x44   : > { %324 = vmatmul.bf16.vlgmr.msra.gmra.mxu0 %v250_v4 }
  0x98   : > { %v333_v15 = vpop.permute.xlu0 %332 }
  0x99   : > { %vm334_vm2 = vcmp.eq.s32.totalorder %v330_v14, %v333_v15 }
  0xc1   : > { %v325_v16 = vpop.f32.mrf.mxu0 }
  0xc2   : > { %v335_v17 = vsel %vm334_vm2, %v325_v16, 0.0  ;;  %v389_v16 = vld [vmem:[#allocation4 + $0x30] sm:$0xff] }
  0xc3   : > { %v337_v18 = vsel %vm336_vm3, %v335_v17, 0.0  ;;  %v395_v17 = vld [vmem:[#allocation4 + $0x60] sm:$0xff] }
  0xc4   : > { %338 = vadd.xlane.f32.xlu0 %v337_v18  ;;  %v384_v18 = vld [vmem:[#allocation4 + $0x8] sm:$0xff] }
  0xc9   : > { %v327_v19 = vpop.f32.mrf.mxu0 }
  0xd2   : > { %v427_v20 = vpop.trf.xlu1 }
  0xe2   : > { %v428_v21 = vpop.trf.xlu1 }
  0xf2   : > { %v429_v30 = vpop.trf.xlu1 }
 0x102   : > { %v430_v36 = vpop.trf.xlu1 }
 0x112   : > { %v431_v43 = vpop.trf.xlu1 }
 0x122   : > { %v432_v48 = vpop.trf.xlu1 }
 0x132   : > { %v433_v57 = vpop.trf.xlu1 }
 0x137   : > { %v339_v31 = vpop.xlane.xlu0 %338 }
 0x138   : > { %v351_v32 = vsel %vm350_vm6, %v339_v31, -1e+30 }
 0x139   : > { %v353_v33 = vsel %vm336_vm3, %v351_v32, -inf }
 0x13a   : > { %v354_v34 = vrot.slane %v353_v33, 4 }
 0x13c   : > { %v355_v35 = vmax.f32 %v353_v33, %v354_v34 }
 0x13e   : > { %v356_v37 = vrot.slane %v355_v35, 2 }
 0x140   : > { %v357_v38 = vmax.f32 %v355_v35, %v356_v37 }
 0x142   : > { %v358_v39 = vrot.slane %v357_v38, 1  ;;  %v434_v4 = vpop.trf.xlu1 }
 0x144   : > { %v359_v41 = vmax.f32 %v357_v38, %v358_v39 }
 0x146   : > { %v360_v42 = vmax.f32 %v352_v40, %v359_v41  ;;  %v397_v41 = vld [vmem:[#allocation4 + $0x70] sm:$0xff] }
 0x148   : > { %v365_v44 = vperm.slane %v360_v42, 0  ;;  %544 = vst.msk [vmem:[#allocation2] sm:$0x1] %vm381_vm7, %v360_v42  ;;  %v361_v47 = vsub.f32 %v352_v40, %v360_v42  ;;  %v391_v40 = vld [vmem:[#allocation4 + $0x40] sm:$0xff]  ;;  %v386_v42 = vld [vmem:[#allocation4 + $0x18] sm:$0xff] }
 0x14a   : > { %v367_v45 = vsub.f32 %v351_v32, %v365_v44  ;;  %v362_v50 = vmul.f32 1.442695, %v361_v47 }
 0x14c   : > { %v368_v46 = vmul.f32 1.442695, %v367_v45 }
 0x14e   : > { %787 = vpow2.f32 %v368_v46 }
 0x14f   : > { %789 = vpow2.f32 %v362_v50 }
 0x154   : > { %v788_v49 = vpop.eup %787 }
 0x155   : > { %v370_v51 = vsel %vm350_vm6, %v788_v49, 0.0  ;;  %v790_v60 = vpop.eup %789 }
 0x156   : > { %v373_v52 = vsel %vm336_vm3, %v370_v51, 0.0  ;;  %v418_v53 = vpack.c.bf16 %v370_v51, %v370_v51  ;;  %v372_v63 = vmul.f32 %v790_v60, %v371_v61  ;;  %v996_v5 = vperm.slane %v790_v60, 0 }
 0x157   : > { %v374_v54 = vrot.slane %v373_v52, 4 }
 0x158   : > { %v461_v55 = vsel %vm459_vm8, %v418_v53, 0  ;;  %v402_v13 = vmul.f32 %v996_v5, %v383_v6  ;;  %v408_v19 = vmul.f32 %v996_v5, %v389_v16  ;;  %v403_v24 = vmul.f32 %v996_v5, %v384_v18  ;;  %v398_v53 = vld [vmem:[#allocation4 + $0x78] sm:$0xff] }
 0x159   : > { %v375_v56 = vadd.f32 %v374_v54, %v373_v52  ;;  %470 = vmatpush.bf16.msra.mxu1 %v461_v55  ;;  %763 = vmatpush.bf16.msra.mxu2 %v461_v55  ;;  %v409_v31 = vmul.f32 %v996_v5, %v390_v28  ;;  %v415_v33 = vmul.f32 %v996_v5, %v396_v29  ;;  %v392_v52 = vld [vmem:[#allocation4 + $0x48] sm:$0xff]  ;;  %v387_v54 = vld [vmem:[#allocation4 + $0x20] sm:$0xff] }
 0x15a   : > { %764 = vmatpush.bf16.msra.mxu3 %v461_v55  ;;  %v416_v45 = vmul.f32 %v996_v5, %v397_v41  ;;  %v411_v55 = vmul.f32 %v996_v5, %v392_v52  ;;  %v406_v60 = vmul.f32 %v996_v5, %v387_v54 }
 0x15b   : > { %v376_v58 = vrot.slane %v375_v56, 2 }
 0x15c   : > { %742 = vmatmul.msk.bf16.vlgmr.msra.gmra.mxu1 %vm336_vm3, %v427_v20  ;;  %745 = vmatmul.msk.bf16.vlgmr.msra.gmra.mxu2 %vm336_vm3, %v430_v36 }
 0x15d   : > { %v377_v59 = vadd.f32 %v376_v58, %v375_v56  ;;  %748 = vmatmul.msk.bf16.vlgmr.msra.gmra.mxu3 %vm336_vm3, %v433_v57  ;;  %v417_v57 = vmul.f32 %v996_v5, %v398_v53 }
 0x15f   : > { %v378_v62 = vrot.slane %v377_v59, 1 }
 0x161   : > { %v379_v0 = vadd.f32 %v378_v62, %v377_v59 }
 0x163   : > { %v380_v1 = vadd.f32 %v379_v0, %v372_v63  ;;  %v393_v0 = vld [vmem:[#allocation4 + $0x50] sm:$0xff] }
 0x165   : > { %382 = vst.msk [vmem:[#allocation3] sm:$0x1] %vm381_vm7, %v380_v1  ;;  %v388_v1 = vld [vmem:[#allocation4 + $0x28] sm:$0xff] }
 0x16c   : > { %743 = vmatmul.msk.bf16.gmra.mxu1 %vm336_vm3, %v428_v21  ;;  %746 = vmatmul.msk.bf16.gmra.mxu2 %vm336_vm3, %v431_v43  ;;  %v414_v21 = vmul.f32 %v996_v5, %v395_v17  ;;  %v410_v43 = vmul.f32 %v996_v5, %v391_v40  ;;  %v394_v17 = vld [vmem:[#allocation4 + $0x58] sm:$0xff] }
 0x16d   : > { %749 = vmatmul.msk.bf16.gmra.mxu3 %vm336_vm3, %v434_v4  ;;  %v412_v4 = vmul.f32 %v996_v5, %v393_v0  ;;  %v413_v18 = vmul.f32 %v996_v5, %v394_v17 }
 0x17c   : > { %744 = vmatmul.msk.bf16.gmra.mxu1 %vm336_vm3, %v429_v30  ;;  %747 = vmatmul.msk.bf16.gmra.mxu2 %vm336_vm3, %v432_v48  ;;  %v385_v30 = vld [vmem:[#allocation4 + $0x10] sm:$0xff]  ;;  %v405_v48 = vmul.f32 %v996_v5, %v386_v42 }
 0x17d   : > { %v404_v36 = vmul.f32 %v996_v5, %v385_v30 }
 0x1d9   : > { %v472_v14 = vpop.f32.mrf.mxu1 }
 0x1da   : > { %v512_v15 = vadd.f32 %v472_v14, %v402_v13  ;;  %v407_v14 = vmul.f32 %v996_v5, %v388_v1 }
 0x1dc   : > { %528 = vst.msk [vmem:[#allocation4] sm:$0xff] %vm336_vm3, %v512_v15 }
 0x1df   : > { %v487_v20 = vpop.f32.mrf.mxu2 }
 0x1e0   : > { %v518_v22 = vadd.f32 %v487_v20, %v408_v19  ;;  %v502_v23 = vpop.f32.mrf.mxu3 }
 0x1e1   : > { %v524_v25 = vadd.f32 %v502_v23, %v414_v21  ;;  %v474_v26 = vpop.f32.mrf.mxu1 }
 0x1e2   : > { %534 = vst.msk [vmem:[#allocation4 + $0x30] sm:$0xff] %vm336_vm3, %v518_v22  ;;  %v513_v27 = vadd.f32 %v474_v26, %v403_v24 }
 0x1e3   : > { %540 = vst.msk [vmem:[#allocation4 + $0x60] sm:$0xff] %vm336_vm3, %v524_v25 }
 0x1e4   : > { %529 = vst.msk [vmem:[#allocation4 + $0x8] sm:$0xff] %vm336_vm3, %v513_v27 }
 0x1e7   : > { %v489_v32 = vpop.f32.mrf.mxu2 }
 0x1e8   : > { %v519_v34 = vadd.f32 %v489_v32, %v409_v31  ;;  %v504_v35 = vpop.f32.mrf.mxu3 }
 0x1e9   : > { %v525_v37 = vadd.f32 %v504_v35, %v415_v33  ;;  %v477_v38 = vpop.f32.mrf.mxu1 }
 0x1ea   : > { %535 = vst.msk [vmem:[#allocation4 + $0x38] sm:$0xff] %vm336_vm3, %v519_v34  ;;  %v514_v39 = vadd.f32 %v477_v38, %v404_v36 }
 0x1eb   : > { %541 = vst.msk [vmem:[#allocation4 + $0x68] sm:$0xff] %vm336_vm3, %v525_v37 }
 0x1ec   : > { %530 = vst.msk [vmem:[#allocation4 + $0x10] sm:$0xff] %vm336_vm3, %v514_v39 }
 0x1ef   : > { %v492_v44 = vpop.f32.mrf.mxu2 }
 0x1f0   : > { %v520_v46 = vadd.f32 %v492_v44, %v410_v43  ;;  %v507_v47 = vpop.f32.mrf.mxu3 }
 0x1f1   : > { %v526_v49 = vadd.f32 %v507_v47, %v416_v45  ;;  %v479_v50 = vpop.f32.mrf.mxu1 }
 0x1f2   : > { %536 = vst.msk [vmem:[#allocation4 + $0x40] sm:$0xff] %vm336_vm3, %v520_v46  ;;  %v515_v51 = vadd.f32 %v479_v50, %v405_v48 }
 0x1f3   : > { %542 = vst.msk [vmem:[#allocation4 + $0x70] sm:$0xff] %vm336_vm3, %v526_v49 }
 0x1f4   : > { %531 = vst.msk [vmem:[#allocation4 + $0x18] sm:$0xff] %vm336_vm3, %v515_v51 }
 0x1f7   : > { %v494_v56 = vpop.f32.mrf.mxu2 }
 0x1f8   : > { %v521_v58 = vadd.f32 %v494_v56, %v411_v55  ;;  %v509_v59 = vpop.f32.mrf.mxu3 }
 0x1f9   : > { %v527_v61 = vadd.f32 %v509_v59, %v417_v57  ;;  %v482_v62 = vpop.f32.mrf.mxu1 }
 0x1fa   : > { %537 = vst.msk [vmem:[#allocation4 + $0x48] sm:$0xff] %vm336_vm3, %v521_v58  ;;  %v516_v63 = vadd.f32 %v482_v62, %v406_v60 }
 0x1fb   : > { %543 = vst.msk [vmem:[#allocation4 + $0x78] sm:$0xff] %vm336_vm3, %v527_v61 }
 0x1fc   : > { %532 = vst.msk [vmem:[#allocation4 + $0x20] sm:$0xff] %vm336_vm3, %v516_v63 }
 0x1ff   : > { %v497_v6 = vpop.f32.mrf.mxu2 }
 0x200   : > { %v522_v13 = vadd.f32 %v497_v6, %v412_v4 }
 0x201   : > { %v484_v15 = vpop.f32.mrf.mxu1 }
 0x202   : > { %538 = vst.msk [vmem:[#allocation4 + $0x50] sm:$0xff] %vm336_vm3, %v522_v13  ;;  %v517_v16 = vadd.f32 %v484_v15, %v407_v14 }
 0x204   : > { %533 = vst.msk [vmem:[#allocation4 + $0x28] sm:$0xff] %vm336_vm3, %v517_v16 }
 0x206   : > { %548 = sbr.rel (%p750_p5) target bundleno = 856 (0x358), region = 48 }
 0x207   : > { %v499_v19 = vpop.f32.mrf.mxu2 }
 0x208   : > { %v523_v20 = vadd.f32 %v499_v19, %v413_v18 }
 0x20a   : > { %539 = vst.msk [vmem:[#allocation4 + $0x58] sm:$0xff] %vm336_vm3, %v523_v20 }
 0x20b   : > { %v549_v21 = vld [vmem:[#allocation3] sm:$0x1]  ;;  %628 = vmatpush.bf16.msra.mxu0 %v910_v2  ;;  %v552_v30 = vld [vmem:[#allocation4 + $0x8] sm:$0xff]  ;;  %v553_v34 = vld [vmem:[#allocation4 + $0x10] sm:$0xff] }
 0x20c   : > { %v550_v22 = vmax.f32 %v549_v21, 1e-30  ;;  %v555_v38 = vld [vmem:[#allocation4 + $0x20] sm:$0xff]  ;;  %v556_v39 = vld [vmem:[#allocation4 + $0x28] sm:$0xff]  ;;  %v557_v42 = vld [vmem:[#allocation4 + $0x30] sm:$0xff] }
 0x20d   : > { %v558_v43 = vld [vmem:[#allocation4 + $0x38] sm:$0xff]  ;;  %v559_v46 = vld [vmem:[#allocation4 + $0x40] sm:$0xff]  ;;  %v561_v50 = vld [vmem:[#allocation4 + $0x50] sm:$0xff] }
 0x20e   : > { %v568_v23 = vperm.slane %v550_v22, 0  ;;  %v563_v55 = vld [vmem:[#allocation4 + $0x60] sm:$0xff]  ;;  %v564_v56 = vld [vmem:[#allocation4 + $0x68] sm:$0xff]  ;;  %v565_v60 = vld [vmem:[#allocation4 + $0x70] sm:$0xff] }
 0x20f   : > { %629 = vmatpush.bf16.msra.mxu0 %v916_v3  ;;  %v551_v3 = vld [vmem:[#allocation4] sm:$0xff]  ;;  %v566_v61 = vld [vmem:[#allocation4 + $0x78] sm:$0xff] }
 0x210   : > { %792 = vrcp.f32 %v568_v23  ;;  %v581_v5 = vand.u32 2147483648, %v568_v23  ;;  %vm575_vm9 = vweird.f32 %v568_v23  ;;  %v579_v27 = vand.u32 2147483647, %v568_v23  ;;  %v791_v4 = vld [vmem:[%s1054_s4] ss:$0 sm:$0xff] }
 0x211   : > { %v562_v51 = vld [vmem:[#allocation4 + $0x58] sm:$0xff] }
 0x212   : > { %v582_v2 = vor.u32 1.1754944e-38, %v581_v5  ;;  %vm580_vm12 = vcmp.eq.f32.partialorder %v579_v27, 8.507059e+37 }
 0x213   : > { %630 = vmatpush.bf16.msra.mxu0 %v924_v7 }
 0x216   : > { %v793_v24 = vpop.eup %792 }
 0x217   : > { %v571_v25 = vmul.f32 %v793_v24, %v568_v23  ;;  %631 = vmatpush.bf16.msra.mxu0 %v930_v8  ;;  %vm576_vm10 = vweird.f32 %v793_v24 }
 0x218   : > { %vm577_vm11 = vmor %vm575_vm9, %vm576_vm10 }
 0x219   : > { %v572_v26 = vsub.f32 1.0, %v571_v25 }
 0x21b   : > { %v573_v28 = vmul.f32 %v793_v24, %v572_v26  ;;  %632 = vmatpush.bf16.msra.mxu0 %v936_v9  ;;  %v554_v9 = vld [vmem:[#allocation4 + $0x18] sm:$0xff] }
 0x21d   : > { %v574_v29 = vadd.f32 %v793_v24, %v573_v28 }
 0x21f   : > { %v578_v31 = vsel %vm577_vm11, %v793_v24, %v574_v29  ;;  %633 = vmatpush.bf16.msra.mxu0 %v942_v10 }
 0x220   : > { %v583_v7 = vsel %vm580_vm12, %v582_v2, %v578_v31 }
 0x221   : > { %v584_v32 = vmul.f32 %v583_v7, %v551_v3  ;;  %v585_v8 = vmul.f32 %v583_v7, %v552_v30  ;;  %v586_v35 = vmul.f32 %v583_v7, %v553_v34  ;;  %v587_v36 = vmul.f32 %v583_v7, %v554_v9 }
 0x222   : > { %v588_v40 = vmul.f32 %v583_v7, %v555_v38  ;;  %v589_v41 = vmul.f32 %v583_v7, %v556_v39  ;;  %v590_v44 = vmul.f32 %v583_v7, %v557_v42  ;;  %v591_v45 = vmul.f32 %v583_v7, %v558_v43 }
 0x223   : > { %v600_v33 = vpack.c.bf16 %v585_v8, %v584_v32  ;;  %634 = vmatpush.bf16.msra.mxu0 %v948_v11  ;;  %v601_v37 = vpack.c.bf16 %v587_v36, %v586_v35  ;;  %v592_v47 = vmul.f32 %v583_v7, %v559_v46  ;;  %v594_v52 = vmul.f32 %v583_v7, %v561_v50 }
 0x224   : > { %v602_v10 = vpack.c.bf16 %v589_v41, %v588_v40  ;;  %v603_v11 = vpack.c.bf16 %v591_v45, %v590_v44  ;;  %v595_v53 = vmul.f32 %v583_v7, %v562_v51  ;;  %v596_v57 = vmul.f32 %v583_v7, %v563_v55 }
 0x225   : > { %612 = vxpose.xlu0.c.b16.start [1/8] (narrow) %v600_v33, 16  ;;  %v597_v58 = vmul.f32 %v583_v7, %v564_v56  ;;  %v598_v62 = vmul.f32 %v583_v7, %v565_v60  ;;  %v599_v63 = vmul.f32 %v583_v7, %v566_v61 }
 0x226   : > { %v605_v54 = vpack.c.bf16 %v595_v53, %v594_v52 }
 0x227   : > { %635 = vmatpush.bf16.msra.mxu0 %v954_v12  ;;  %v560_v12 = vld [vmem:[#allocation4 + $0x48] sm:$0xff]  ;;  %v606_v59 = vpack.c.bf16 %v597_v58, %v596_v57  ;;  %v607_v0 = vpack.c.bf16 %v599_v63, %v598_v62 }
 0x228   : > { %v593_v48 = vmul.f32 %v583_v7, %v560_v12 }
 0x22a   : > { %v604_v49 = vpack.c.bf16 %v593_v48, %v592_v47 }
 0x235   : > { %613 = vxpose.xlu0.c.b16.cont [2/8] (narrow) %v601_v37, 16 }
 0x245   : > { %614 = vxpose.xlu0.c.b16.cont [3/8] (narrow) %v602_v10, 16 }
 0x255   : > { %615 = vxpose.xlu0.c.b16.cont [4/8] (narrow) %v603_v11, 16 }
 0x265   : > { %616 = vxpose.xlu0.c.b16.cont [5/8] (narrow) %v604_v49, 16 }
 0x275   : > { %617 = vxpose.xlu0.c.b16.cont [6/8] (narrow) %v605_v54, 16 }
 0x285   : > { %618 = vxpose.xlu0.c.b16.cont [7/8] (narrow) %v606_v59, 16 }
 0x295   : > { %619 = vxpose.xlu0.c.b16.end [8/8] (narrow) %v607_v0, 16 }
 0x2d1   : > { %v620_v1 = vpop.trf.xlu0 }
 0x2d2   : > { %636 = vmatmul.bf16.vlgmr.msra.gmra.mxu0 %v620_v1 }
 0x34f   : > { %v637_v6 = vpop.f32.mrf.mxu0 }
 0x350   : > { %v638_v13 = vadd.f32 %v791_v4, %v637_v6 }
 0x352   : > { %641 = vst.msk [vmem:[#allocation5] sm:$0xff] %vm336_vm3, %v638_v13 }
 0x357   : > { %v639_v14 = vpop.f32.mrf.mxu0 }
 0x358 PF: > { %p772_p6 = scmp.eq.s32.totalorder %s874_s19, 2  ;;  %s837_s27 = smov [#allocation5]  }
 0x359   : > { %s648_s28 = sshll.u32 %s837_s27, 4  ;;  %s650_s6 = sshll.u32 %s1055_s5, 4  ;;  %s649_s28 = int_to_ptr.vmem [resolvable:$true] %s648_s28  ;;  %s651_s6 = int_to_ptr.hbm [resolvable:$true] %s650_s6 }
 0x35a   : > { %769 = dma.vmem_to_hbm [thread:$0]  (%p772_p6), %s649_s28, 128, %s651_s6, [#allocation6]  }
 0x35b   : > { %827 = dma.done.wait (%p772_p6), [#allocation6], 128  }
 0x35c   : > { %829 = vsyncadd (%p772_p6), [#allocation6], 4294967168 }
 0x35d PF: > { %s16_s18 = sadd.s32 1, %s832_s18  }
 0x35e   : > { %p13_p7 = scmp.ge.s32.totalorder %s16_s18, 5  }
 0x360   :  { %15 = sbr.rel (!%p13_p7) target bundleno = 1 (0x1), region = 78 }
 0x365   :  { %664 = vsyncpa [#allocation6], 1 }
 0x366   :  { %666 = vsyncpa [#allocation6 + $0x1], 1 }

</bundles_post_ra>
